<compile_context>
chip_gen: v5e
topology: v5e:2x2
jax: 0.10.0
libtpu: 0.0.40
codegen_flags: <defaults>
</compile_context>

<pallas_src>
import math

import jax
import jax.numpy as jnp
from jax.experimental import pallas as pl
from jax.experimental.pallas import tpu as pltpu


def _make_eca_kernel(k, hw, g_per_img):
    """Kernel specialized on static fold factor k, spatial size HW, G = C//k."""

    def body(w_ref, seg_ref, segt_ref, x_ref, o_ref, pbuf):
        # w_ref   : SMEM f32[3]              conv1d taps (k=3, pad=1, no bias)
        # seg_ref : VMEM (L, k) x.dtype      segment indicator  (k > 1 only)
        # segt_ref: VMEM (k, L) f32          its transpose      (k > 1 only)
        # x_ref   : VMEM (n, L) native dtype n = bt*G rows, L = k*HW lanes
        # o_ref   : VMEM (n, L)
        # pbuf    : VMEM (n+2, k+2) f32      scratch for shifted conv taps
        n, _ = x_ref.shape
        inv_hw = 1.0 / hw
        w0 = w_ref[0]
        w1 = w_ref[1]
        w2 = w_ref[2]

        x = x_ref[...]  # (n, L), native dtype

        # ---- global average pool per original channel (f32 accumulation) ----
        if k == 1:
            p = jnp.sum(x, axis=-1, keepdims=True, dtype=jnp.float32) * inv_hw
        else:
            # row r holds k channels, each HW lanes wide; seg[l, j] = (l//HW == j)
            p = jnp.dot(x, seg_ref[...],
                        preferred_element_type=jnp.float32,
                        precision=jax.lax.Precision.HIGHEST) * inv_hw      # (n, k)

        # ---- 3-tap conv along the original channel order c = row*k + j ------
        # Shifted taps via a tiny scratch.  The scratch border (row 0, row n+1,
        # col 0, col k+1) is addressable but its values are never consumed:
        # boundary taps are replaced by the selects below, so no zero-init.
        pbuf[pl.ds(1, n), pl.ds(1, k)] = p
        prev_last = pbuf[pl.ds(0, n), pl.ds(k, 1)]   # p[r-1, k-1]  (cross-row tap)
        next_first = pbuf[pl.ds(2, n), pl.ds(1, 1)]  # p[r+1, 0]    (cross-row tap)

        # Zero the taps that would cross an image's channel boundary.
        row = jax.lax.broadcasted_iota(jnp.int32, (n, 1), 0)
        prev_v = jnp.where(row % g_per_img != 0, prev_last, 0.0)
        next_v = jnp.where(row % g_per_img != g_per_img - 1, next_first, 0.0)

        if k == 1:
            left, right = prev_v, next_v
        else:
            left_in = pbuf[pl.ds(1, n), pl.ds(0, k)]    # p[r, j-1] for j >= 1
            right_in = pbuf[pl.ds(1, n), pl.ds(2, k)]   # p[r, j+1] for j <= k-2
            lane = jax.lax.broadcasted_iota(jnp.int32, (1, k), 1)
            left = jnp.where(lane == 0, prev_v, left_in)
            right = jnp.where(lane == k - 1, next_v, right_in)

        y = w0 * left + w1 * p + w2 * right           # (n, k) f32
        s = jax.nn.sigmoid(y)                         # gate, kept in f32

        # ---- scale x by the per-channel gate (cast only the final product) --
        if k == 1:
            o_ref[...] = (x * s).astype(o_ref.dtype)  # lane broadcast of (n, 1)
        else:
            sb = jnp.dot(s, segt_ref[...],
                         preferred_element_type=jnp.float32,
                         precision=jax.lax.Precision.HIGHEST)  # (n, L) expanded gate
            o_ref[...] = (x * sb).astype(o_ref.dtype)

    if k == 1:
        def kernel(w_ref, x_ref, o_ref, pbuf):
            body(w_ref, None, None, x_ref, o_ref, pbuf)
    else:
        def kernel(w_ref, seg_ref, segt_ref, x_ref, o_ref, pbuf):
            body(w_ref, seg_ref, segt_ref, x_ref, o_ref, pbuf)
    return kernel


def _pick_fold(c, hw):
    """Smallest divisor k of C such that k*HW is a multiple of 128 (else 1)."""
    for k in range(1, c + 1):
        if c % k == 0 and (k * hw) % 128 == 0:
            return k
    return 1


def _vmem_capacity_bytes():
    try:
        info = pltpu.get_tpu_info()
        return int(getattr(info, "vmem_capacity_bytes", 64 * 1024 * 1024))
    except Exception:
        return 64 * 1024 * 1024  # conservative default: v7x per-TensorCore VMEM


def eca_attention(x, conv_w):
    """x: (B, C, H, W); conv_w: (1, 1, 3) Conv1d weight (no bias)."""
    B, C, H, W = x.shape
    HW = H * W
    itemsize = jnp.dtype(x.dtype).itemsize

    # Lane-dense folded view (free, row-major reshape): (B,C,H,W) -> (B*G, L).
    k = _pick_fold(C, HW)
    G = C // k
    L = k * HW
    xf = x.reshape(B * G, L)
    w = conv_w.reshape(3).astype(jnp.float32)

    # ---- block sizing against detected VMEM (v5e/v6e 128 MiB, v7x 64 MiB) ----
    vmem_cap = _vmem_capacity_bytes()
    seg_bytes = (L * k * itemsize + k * L * 4) if k > 1 else 0
    per_image_io = C * HW * itemsize                # one image, one direction
    per_image_cost = 4 * per_image_io               # double-buffered in + out
    if k > 1:
        per_image_cost += 2 * C * HW * 4            # f32 gate plane from matmul
    budget = (vmem_cap * 3) // 4 - seg_bytes - (2 << 20)
    bt = int(max(1, min(B, budget // max(1, per_image_cost))))
    # TODO(synk): spatially tile HW when a single image exceeds the VMEM budget.

    m = 8 // math.gcd(G, 8)  # bt granularity that keeps (bt*G) % 8 == 0
    if bt < B:
        bt = (bt // m) * m
        if bt == 0:
            bt = min(B, m)
    # v7x megacore: keep >= 2 "parallel" grid steps when halves stay >= 1 MiB.
    # TODO(synk): for B == 1 on v7x a channel-halo split would feed both cores.
    if bt == B and B >= 2:
        half = -(-((B + 1) // 2) // m) * m
        if half < B and half * per_image_io >= (1 << 20):
            bt = half

    grid = (pl.cdiv(B, bt),)  # non-divisor B handled by Pallas boundary masking
    n_rows = bt * G

    # Scoped VMEM limit derived from the actual footprint, clamped to capacity.
    needed = (bt * per_image_cost + seg_bytes
              + (n_rows + 2) * (k + 2) * 4 + (4 << 20))
    vmem_limit = int(min((vmem_cap * 9) // 10, max(needed, 16 * 1024 * 1024)))

    in_specs = [pl.BlockSpec(memory_space=pltpu.MemorySpace.SMEM)]  # conv taps
    args = [w]
    if k > 1:
        lane = jax.lax.broadcasted_iota(jnp.int32, (L, k), 0)
        col = jax.lax.broadcasted_iota(jnp.int32, (L, k), 1)
        seg = (lane // HW == col).astype(x.dtype)    # (L, k) pooling matrix
        segt = seg.T.astype(jnp.float32)             # (k, L) gate expansion
        in_specs += [
            pl.BlockSpec((L, k), lambda i: (0, 0)),
            pl.BlockSpec((k, L), lambda i: (0, 0)),
        ]
        args += [seg, segt]
    in_specs.append(pl.BlockSpec((n_rows, L), lambda i: (i, 0)))
    args.append(xf)

    out = pl.pallas_call(
        _make_eca_kernel(k, HW, G),
        out_shape=jax.ShapeDtypeStruct((B * G, L), x.dtype),
        grid=grid,
        in_specs=in_specs,
        out_specs=pl.BlockSpec((n_rows, L), lambda i: (i, 0)),
        scratch_shapes=[pltpu.VMEM((n_rows + 2, k + 2), jnp.float32)],
        compiler_params=pltpu.CompilerParams(
            dimension_semantics=("parallel",),
            vmem_limit_bytes=vmem_limit,
        ),
    )(*args)
    return out.reshape(B, C, H, W)


def eca_reference(x, conv_w):
    """Pure-JAX reference matching the PyTorch forward exactly."""
    w = conv_w.reshape(3).astype(jnp.float32)
    p = jnp.mean(x.astype(jnp.float32), axis=(2, 3))  # (B, C)
    pp = jnp.pad(p, ((0, 0), (1, 1)))                 # zero pad channels
    y = w[0] * pp[:, :-2] + w[1] * pp[:, 1:-1] + w[2] * pp[:, 2:]
    s = jax.nn.sigmoid(y)[:, :, None, None]
    return (x * s).astype(x.dtype)


if __name__ == "__main__":
    key = jax.random.PRNGKey(0)
    kx, kw, kx2 = jax.random.split(key, 3)

    # Deterministic Conv1d(1, 1, 3, bias=False) weight, shape (out=1, in=1, k=3).
    conv_w = jax.random.uniform(kw, (1, 1, 3), dtype=jnp.float32,
                                minval=-0.5, maxval=0.5)

    # Primary shape: HW = 256 is already lane-dense (k = 1 path).
    x = jax.random.normal(kx, (2, 4, 16, 16), dtype=jnp.float32)
    out = eca_attention(x, conv_w)
    jax.block_until_ready(out)
    ref = eca_reference(x, conv_w)
    assert out.shape == x.shape and out.dtype == x.dtype
    assert jnp.allclose(out, ref, atol=1e-5, rtol=1e-5)

    # Secondary shape exercising the lane-dense channel-folded path
    # (HW = 16 -> fold k = 8 channels per row, L = 128).
    x2 = jax.random.normal(kx2, (2, 32, 4, 4), dtype=jnp.float32)
    out2 = eca_attention(x2, conv_w)
    jax.block_until_ready(out2)
    ref2 = eca_reference(x2, conv_w)
    assert out2.shape == x2.shape and out2.dtype == x2.dtype
    assert jnp.allclose(out2, ref2, atol=1e-4, rtol=1e-4)

    print("KERNEL_OK")
</pallas_src>

<mosaic_0001>
module attributes {stable_mosaic.version = 11 : i64} {
  func.func @kernel(%arg0: i32, %arg1: memref<3xf32, #tpu.memory_space<smem>>, %arg2: memref<8x256xf32, #tpu.memory_space<vmem>>, %arg3: memref<8x256xf32, #tpu.memory_space<vmem>>, %arg4: memref<10x3xf32, #tpu.memory_space<vmem>>) attributes {dimension_semantics = [#tpu.dimension_semantics<parallel>], iteration_bounds = array<i64: 1>, scalar_prefetch = 0 : i64, scratch_operands = 1 : i64, tpu.core_type = #tpu.core_type<tc>, window_params = [{transform_indices = @transform_0, window_bounds = array<i64: 3>}, {transform_indices = @transform_1, window_bounds = array<i64: 8, 256>}, {transform_indices = @transform_2, window_bounds = array<i64: 8, 256>}]} {
    %c0 = arith.constant 0 : index
    %0 = memref.load %arg1[%c0] : memref<3xf32, #tpu.memory_space<smem>>
    %c1 = arith.constant 1 : index
    %1 = memref.load %arg1[%c1] : memref<3xf32, #tpu.memory_space<smem>>
    %c2 = arith.constant 2 : index
    %2 = memref.load %arg1[%c2] : memref<3xf32, #tpu.memory_space<smem>>
    %c0_0 = arith.constant 0 : index
    %c0_1 = arith.constant 0 : index
    %3 = vector.load %arg2[%c0_0, %c0_1] : memref<8x256xf32, #tpu.memory_space<vmem>>, vector<8x256xf32>
    %cst = arith.constant dense<0.000000e+00> : vector<8xf32>
    %4 = vector.multi_reduction <add>, %3, %cst [1] : vector<8x256xf32> to vector<8xf32>
    %5 = vector.shape_cast %4 : vector<8xf32> to vector<8x1xf32>
    %cst_2 = arith.constant 3.906250e-03 : f32
    %6 = vector.broadcast %cst_2 : f32 to vector<8x1xf32>
    %7 = arith.mulf %5, %6 : vector<8x1xf32>
    %c1_3 = arith.constant 1 : index
    %c1_4 = arith.constant 1 : index
    %8 = vector.load %arg4[%c1_3, %c1_4] : memref<10x3xf32, #tpu.memory_space<vmem>>, vector<8x1xf32>
    tpu.vector_store %arg4[%c1_3, %c1_4], %7 {strides = array<i32>} : memref<10x3xf32, #tpu.memory_space<vmem>>, vector<8x1xf32>,
    %c0_5 = arith.constant 0 : index
    %c1_6 = arith.constant 1 : index
    %9 = vector.load %arg4[%c0_5, %c1_6] : memref<10x3xf32, #tpu.memory_space<vmem>>, vector<8x1xf32>
    %c2_7 = arith.constant 2 : index
    %c1_8 = arith.constant 1 : index
    %10 = vector.load %arg4[%c2_7, %c1_8] : memref<10x3xf32, #tpu.memory_space<vmem>>, vector<8x1xf32>
    %11 = tpu.iota {dimensions = array<i32: 0>} : vector<8x1xi32>
    %c4_i32 = arith.constant 4 : i32
    %c0_i32 = arith.constant 0 : i32
    %12 = arith.cmpi eq, %c4_i32, %c0_i32 : i32
    %c1_i32 = arith.constant 1 : i32
    %13 = arith.select %12, %c1_i32, %c4_i32 : i32
    %14 = vector.broadcast %13 : i32 to vector<8x1xi32>
    %15 = arith.remsi %11, %14 : vector<8x1xi32>
    %c0_i32_9 = arith.constant 0 : i32
    %16 = vector.broadcast %c0_i32_9 : i32 to vector<8x1xi32>
    %17 = arith.cmpi ne, %15, %16 : vector<8x1xi32>
    %c0_i32_10 = arith.constant 0 : i32
    %18 = vector.broadcast %c0_i32_10 : i32 to vector<8x1xi32>
    %19 = arith.cmpi slt, %15, %18 : vector<8x1xi32>
    %c0_i32_11 = arith.constant 0 : i32
    %20 = arith.cmpi slt, %13, %c0_i32_11 : i32
    %21 = vector.broadcast %20 : i1 to vector<8x1xi1>
    %22 = vector.broadcast %21 : vector<8x1xi1> to vector<8x1xi1>
    %23 = arith.xori %19, %22 : vector<8x1xi1>
    %24 = arith.andi %23, %17 : vector<8x1xi1>
    %25 = vector.broadcast %13 : i32 to vector<8x1xi32>
    %26 = arith.addi %15, %25 : vector<8x1xi32>
    %27 = arith.select %24, %26, %15 : vector<8x1xi1>, vector<8x1xi32>
    %c0_i32_12 = arith.constant 0 : i32
    %28 = vector.broadcast %c0_i32_12 : i32 to vector<8x1xi32>
    %29 = arith.cmpi ne, %27, %28 : vector<8x1xi32>
    %cst_13 = arith.constant 0.000000e+00 : f32
    %30 = vector.broadcast %cst_13 : f32 to vector<8x1xf32>
    %31 = arith.select %29, %9, %30 : vector<8x1xi1>, vector<8x1xf32>
    %c4_i32_14 = arith.constant 4 : i32
    %c0_i32_15 = arith.constant 0 : i32
    %32 = arith.cmpi eq, %c4_i32_14, %c0_i32_15 : i32
    %c1_i32_16 = arith.constant 1 : i32
    %33 = arith.select %32, %c1_i32_16, %c4_i32_14 : i32
    %34 = vector.broadcast %33 : i32 to vector<8x1xi32>
    %35 = arith.remsi %11, %34 : vector<8x1xi32>
    %c0_i32_17 = arith.constant 0 : i32
    %36 = vector.broadcast %c0_i32_17 : i32 to vector<8x1xi32>
    %37 = arith.cmpi ne, %35, %36 : vector<8x1xi32>
    %c0_i32_18 = arith.constant 0 : i32
    %38 = vector.broadcast %c0_i32_18 : i32 to vector<8x1xi32>
    %39 = arith.cmpi slt, %35, %38 : vector<8x1xi32>
    %c0_i32_19 = arith.constant 0 : i32
    %40 = arith.cmpi slt, %33, %c0_i32_19 : i32
    %41 = vector.broadcast %40 : i1 to vector<8x1xi1>
    %42 = vector.broadcast %41 : vector<8x1xi1> to vector<8x1xi1>
    %43 = arith.xori %39, %42 : vector<8x1xi1>
    %44 = arith.andi %43, %37 : vector<8x1xi1>
    %45 = vector.broadcast %33 : i32 to vector<8x1xi32>
    %46 = arith.addi %35, %45 : vector<8x1xi32>
    %47 = arith.select %44, %46, %35 : vector<8x1xi1>, vector<8x1xi32>
    %c3_i32 = arith.constant 3 : i32
    %48 = vector.broadcast %c3_i32 : i32 to vector<8x1xi32>
    %49 = arith.cmpi ne, %47, %48 : vector<8x1xi32>
    %cst_20 = arith.constant 0.000000e+00 : f32
    %50 = vector.broadcast %cst_20 : f32 to vector<8x1xf32>
    %51 = arith.select %49, %10, %50 : vector<8x1xi1>, vector<8x1xf32>
    %52 = vector.broadcast %0 : f32 to vector<8x1xf32>
    %53 = arith.mulf %52, %31 : vector<8x1xf32>
    %54 = vector.broadcast %1 : f32 to vector<8x1xf32>
    %55 = arith.mulf %54, %7 : vector<8x1xf32>
    %56 = arith.addf %53, %55 : vector<8x1xf32>
    %57 = vector.broadcast %2 : f32 to vector<8x1xf32>
    %58 = arith.mulf %57, %51 : vector<8x1xf32>
    %59 = arith.addf %56, %58 : vector<8x1xf32>
    %60 = arith.negf %59 : vector<8x1xf32>
    %61 = math.exp %60 : vector<8x1xf32>
    %cst_21 = arith.constant 1.000000e+00 : f32
    %62 = vector.broadcast %cst_21 : f32 to vector<8x1xf32>
    %63 = arith.addf %62, %61 : vector<8x1xf32>
    %64 = arith.divf %62, %63 : vector<8x1xf32>
    %65 = vector.broadcast %64 : vector<8x1xf32> to vector<8x256xf32>
    %66 = arith.mulf %3, %65 : vector<8x256xf32>
    %c0_22 = arith.constant 0 : index
    %c0_23 = arith.constant 0 : index
    %67 = vector.load %arg3[%c0_22, %c0_23] : memref<8x256xf32, #tpu.memory_space<vmem>>, vector<8x256xf32>
    tpu.vector_store %arg3[%c0_22, %c0_23], %66 {strides = array<i32>} : memref<8x256xf32, #tpu.memory_space<vmem>>, vector<8x256xf32>,
    return
  }
  func.func @transform_0(%arg0: i32) -> i32 {
    %c0_i32 = arith.constant 0 : i32
    %c0_i32_0 = arith.constant 0 : i32
    return %c0_i32 : i32
  }
  func.func @transform_1(%arg0: i32) -> (i32, i32) {
    %c0_i32 = arith.constant 0 : i32
    %c0_i32_0 = arith.constant 0 : i32
    return %arg0, %c0_i32 : i32, i32
  }
  func.func @transform_2(%arg0: i32) -> (i32, i32) {
    %c0_i32 = arith.constant 0 : i32
    %c0_i32_0 = arith.constant 0 : i32
    return %arg0, %c0_i32 : i32, i32
  }
}

</mosaic_0001>

<bundles_post_ra>
// kernel: tpu_custom_call.1
= control target key start
LH: loop header
LB: loop body
LE: loop exit
PB: predicated region body
PF: predicated region fallthrough
CT: control target
= control target key end

     0   :  { %7 = vsyncpa [#allocation6], 0  ;;  %s230_s0 = inlined_call_operand.hbm [shape: f32[3], index: 0, kind: input, shape index: {}]   ;;  %s231_s1 = inlined_call_operand.hbm [shape: f32[8,256], index: 1, kind: input, shape index: {}]   ;;  %s232_s2 = inlined_call_operand.hbm [shape: f32[8,256], index: 2, kind: output, shape index: {}]  }
   0x1   :  { %8 = vsyncpa [#allocation4], 0 }
   0x2   :  { %9 = vsyncpa [#allocation5], 0  ;;  %s15_s11 = sshll.u32 %s230_s0, 4  ;;  %s24_s14 = sshll.u32 %s231_s1, 4  ;;  %s16_s11 = int_to_ptr.hbm [resolvable:$true] %s15_s11  ;;  %s25_s14 = int_to_ptr.hbm [resolvable:$true] %s24_s14 }
   0x3   :  { %s202_s15 = smov [#allocation3]   ;;  %s203_s16 = smov [#allocation7]  }
   0x4   :  { %18 = dma.hbm_to_smem %s16_s11, 16, %s202_s15, [#allocation6]  }
   0x5   :  { %s26_s17 = sshll.u32 %s203_s16, 4  ;;  %s27_s17 = int_to_ptr.vmem [resolvable:$true] %s26_s17 }
   0x6   :  { %29 = dma.hbm_to_vmem [thread:$0]  %s25_s14, 256, %s27_s17, [#allocation4]  }
   0x7   :  { %196 = dma.done.wait [#allocation6], 16  }
   0x8   :  { %197 = vsyncadd [#allocation6], 4294967280 }
   0x9   :  { %198 = dma.done.wait [#allocation4], 256  }
   0xa   :  { %199 = vsyncadd [#allocation4], 4294967040 }
   0xb   :  { %38 = sfence }
   0xc   :  { %v42_v0 = vld [vmem:[#allocation7] sm:$0xff]  ;;  %v43_v1 = vld [vmem:[#allocation7 + $0x8] sm:$0xff]  ;;  %v52_v3 = vlaneseq  ;;  %v204_v4 = vmov 1   ;;  %vm48_vm0 = vcmask 15368   ;;  %s39_s0 = sld [smem:[#allocation3]]  ;;  %s205_s19 = smov [#allocation8]  }
   0xd   :  { %v44_v2 = vadd.f32 %v43_v1, %v42_v0  ;;  %131 = vset.pattern.permute.xlu0 %v204_v4  ;;  %s124_s1 = sld [smem:[#allocation3 + $0x1]]  ;;  %s111_s20 = sshll.u32 %s205_s19, 4  ;;  %s112_s20 = int_to_ptr.vmem [resolvable:$true] %s111_s20 }
   0xe   :  { %v53_v5 = vshrl.u32 %v52_v3, 7  ;;  %s125_s18 = sld [smem:[#allocation3 + $0x2]]  ;;  %s113_s23 = sshll.u32 %s232_s2, 4  ;;  %s114_s23 = int_to_ptr.hbm [resolvable:$true] %s113_s23 }
   0xf   :  { %45 = vadd.xlane.f32.xlu0 %v44_v2 }
  0x10   :  { %v58_v8 = vand.u32 3, %v53_v5 }
  0x12   :  { %vm66_vm1 = vcmp.ne.s32.totalorder %v58_v8, 0  ;;  %vm68_vm2 = vcmp.ne.s32.totalorder %v58_v8, 3  ;;  %v70_v9 = vstv %s39_s0 }
  0x13   :  { %v72_v10 = vstv %s124_s1 }
  0x14   :  { %v75_v15 = vstv %s125_s18 }
  0x82   :  { %v46_v6 = vpop.xlane.xlu0 %45 }
  0x83   :  { %v47_v7 = vmul.f32 0.00390625, %v46_v6 }
  0x85   :  { %49 = vst.msk [vmem:[#allocation2 + $0x1] sm:$0xff] %vm48_vm0, %v47_v7  ;;  %v73_v17 = vmul.f32 %v72_v10, %v47_v7 }
  0x8c   :  { %v50_v11 = vld [vmem:[#allocation2] sm:$0xff] }
  0x8d   :  { %v51_v12 = vld [vmem:[#allocation2 + $0x2] sm:$0xff]  ;;  %v67_v13 = vsel %vm66_vm1, %v50_v11, 0.0 }
  0x8e   :  { %v69_v14 = vsel %vm68_vm2, %v51_v12, 0.0  ;;  %v71_v16 = vmul.f32 %v70_v9, %v67_v13 }
  0x8f   :  { %v76_v19 = vmul.f32 %v75_v15, %v69_v14 }
  0x90   :  { %v74_v18 = vadd.f32 %v73_v17, %v71_v16 }
  0x92   :  { %v77_v20 = vadd.f32 %v76_v19, %v74_v18 }
  0x94   :  { %v126_v21 = vmul.f32 -1.442695, %v77_v20 }
  0x96   :  { %132 = vpow2.f32 %v126_v21 }
  0x9c   :  { %v133_v22 = vpop.eup %132 }
  0x9d   :  { %v81_v23 = vadd.f32 1.0, %v133_v22 }
  0x9f   :  { %134 = vrcp.f32 %v81_v23  ;;  %v93_v27 = vand.u32 2147483648, %v81_v23  ;;  %v91_v29 = vand.u32 2147483647, %v81_v23  ;;  %vm87_vm4 = vweird.f32 %v81_v23 }
  0xa1   :  { %v94_v31 = vor.u32 1.1754944e-38, %v93_v27  ;;  %vm92_vm6 = vcmp.eq.f32.partialorder %v91_v29, 8.507059e+37 }
  0xa5   :  { %v135_v24 = vpop.eup %134 }
  0xa6   :  { %v83_v25 = vmul.f32 %v135_v24, %v81_v23  ;;  %vm88_vm3 = vweird.f32 %v135_v24 }
  0xa7   :  { %vm89_vm5 = vmor %vm87_vm4, %vm88_vm3 }
  0xa8   :  { %v84_v26 = vsub.f32 1.0, %v83_v25 }
  0xaa   :  { %v85_v28 = vmul.f32 %v135_v24, %v84_v26 }
  0xac   :  { %v86_v30 = vadd.f32 %v135_v24, %v85_v28 }
  0xae   :  { %v90_v32 = vsel %vm89_vm5, %v135_v24, %v86_v30 }
  0xaf   :  { %v95_v33 = vsel %vm92_vm6, %v94_v31, %v90_v32 }
  0xb0   :  { %99 = vperm.xlu0 %131, %v95_v33  }
 0x122   :  { %v100_v34 = vpop.permute.xlu0 %99 }
 0x123   :  { %v102_v35 = vmul.f32 %v100_v34, %v42_v0  ;;  %v103_v36 = vmul.f32 %v100_v34, %v43_v1 }
 0x125   :  { %104 = vst [vmem:[#allocation8] sm:$0xff] %v102_v35 }
 0x126   :  { %105 = vst [vmem:[#allocation8 + $0x8] sm:$0xff] %v103_v36 }
 0x127   :  { %116 = dma.vmem_to_hbm [thread:$0]  %s112_s20, 256, %s114_s23, [#allocation5]  }
 0x128   :  { %200 = dma.done.wait [#allocation5], 256  }
 0x129   :  { %201 = vsyncadd [#allocation5], 4294967040 }
 0x12a   :  { %121 = vsyncpa [#allocation4], 1 }
 0x12b   :  { %122 = vsyncpa [#allocation5], 1 }
 0x12c   :  { %123 = vsyncpa [#allocation6], 1 }

</bundles_post_ra>
